<compile_context>
chip_gen: v5e
topology: v5e:2x2
jax: 0.10.0
libtpu: 0.0.40
codegen_flags: <defaults>
</compile_context>

<pallas_src>
import functools

import jax
import jax.numpy as jnp
from jax.experimental import pallas as pl
from jax.experimental.pallas import tpu as pltpu


def _round_up(x, m):
    return ((x + m - 1) // m) * m


def _bt_kernel(idx_ref, a_ref, o_ref):
    # idx_ref : VMEM int32 (3, TB)     rows = (i, j, k), batch on lanes
    # a_ref   : VMEM f32  (M_pad, M)   rows 0..M-1 = 2*G, row M = -||v||^2
    # o_ref   : VMEM f32  (1, TB)
    m_pad, m = a_ref.shape
    tb = o_ref.shape[1]

    i_row = idx_ref[0:1, :]                                         # (1, TB)
    j_row = idx_ref[1:2, :]
    k_row = idx_ref[2:3, :]

    # Selector difference: column b has +1 at row j_b, -1 at row k_b.
    iota_m = jax.lax.broadcasted_iota(jnp.int32, (m, tb), 0)
    doh = ((j_row == iota_m).astype(jnp.float32)
           - (k_row == iota_m).astype(jnp.float32))                 # (M, TB)

    # One MXU matmul:
    #   t[r, b] = 2*G[r, j_b] - 2*G[r, k_b]          for r < M
    #   t[M, b] = ||v_{k_b}||^2 - ||v_{j_b}||^2
    t = jnp.dot(a_ref[...], doh,
                preferred_element_type=jnp.float32,
                precision=jax.lax.Precision.HIGHEST)                # (M_pad, TB)

    # Pick row i_b plus the norm row (index == M) and reduce over sublanes.
    iota_p = jax.lax.broadcasted_iota(jnp.int32, (m_pad, tb), 0)
    sel = jnp.logical_or(i_row == iota_p, iota_p == m)
    s = jnp.sum(jnp.where(sel, t, 0.0), axis=0, keepdims=True)      # (1, TB)
    o_ref[...] = jax.nn.sigmoid(s)


@functools.partial(jax.jit, static_argnames=("tile_b",))
def vector_bt_norm(u_weight, v_weight, i_idx, j_idx, k_idx, *, tile_b=2048):
    """Pallas implementation of VectorBT_norm.forward. Returns f32[B]."""
    num_models, d = u_weight.shape
    B = i_idx.shape[0]

    # Lane-aligned batch tile: multiple of 128, capped at tile_b.
    tb = _round_up(min(int(tile_b), _round_up(B, 128)), 128)
    b_pad = _round_up(B, tb)
    num_tiles = b_pad // tb

    # Pack the three index streams into one lane-dense (3, B_pad) block.
    # Padded slots use index 0 (valid row); their outputs are sliced off.
    def pad_idx(x):
        return jnp.pad(x.astype(jnp.int32), (0, b_pad - B))

    idx = jnp.stack([pad_idx(i_idx), pad_idx(j_idx), pad_idx(k_idx)], axis=0)

    # Precompute the augmented Gram table once per call (O(M^2 d), tiny vs B).
    u_w = u_weight.astype(jnp.float32)
    v_w = v_weight.astype(jnp.float32)
    g2 = 2.0 * jnp.dot(u_w, v_w.T, precision=jax.lax.Precision.HIGHEST)  # (M, M)
    nv = jnp.sum(v_w * v_w, axis=-1)                                     # (M,)
    a = jnp.concatenate([g2, -nv[None, :]], axis=0)                      # (M+1, M)
    m_pad = _round_up(num_models + 1, 8)
    a = jnp.pad(a, ((0, m_pad - (num_models + 1)), (0, 0)))              # (M_pad, M)

    idx_spec = pl.BlockSpec((3, tb), lambda t: (0, t))
    tbl_spec = pl.BlockSpec((m_pad, num_models), lambda t: (0, 0))  # resident
    out_spec = pl.BlockSpec((1, tb), lambda t: (0, t))

    # VMEM budget: resident table (2 pipeline buffers), idx/out tiles (2
    # buffers each) and a generous allowance for the (M_pad, TB) working set.
    # Cap at ~75% of physical VMEM so the compiler keeps scratch headroom
    # (v7x: 64 MiB physical -> ~48 MiB; v5e/v6e: 128 MiB -> up to ~96 MiB).
    table_bytes = 2 * m_pad * num_models * 4
    tile_bytes = 2 * (3 * tb * 4 + tb * 4)
    work_bytes = 8 * m_pad * tb * 4
    needed = table_bytes + tile_bytes + work_bytes + (4 << 20)
    try:
        phys = int(pltpu.get_tpu_info().vmem_capacity_bytes)
    except Exception:
        phys = 64 << 20
    vmem_limit = int(min(max(needed, 32 << 20), (phys * 3) // 4))

    out = pl.pallas_call(
        _bt_kernel,
        out_shape=jax.ShapeDtypeStruct((1, b_pad), jnp.float32),
        grid_spec=pltpu.PrefetchScalarGridSpec(
            num_scalar_prefetch=0,
            grid=(num_tiles,),
            in_specs=[idx_spec, tbl_spec],
            out_specs=out_spec,
        ),
        compiler_params=pltpu.CompilerParams(
            dimension_semantics=("parallel",),   # independent tiles -> megacore
            vmem_limit_bytes=vmem_limit,
        ),
    )(idx, a)

    return out[0, :B]


def _reference(u_weight, v_weight, i_idx, j_idx, k_idx):
    u_i = u_weight[i_idx]
    v_j = v_weight[j_idx]
    v_k = v_weight[k_idx]
    score_j = -jnp.sum((u_i - v_j) ** 2, axis=-1)
    score_k = -jnp.sum((u_i - v_k) ** 2, axis=-1)
    return jax.nn.sigmoid(score_j - score_k)


if __name__ == "__main__":
    num_models = 16
    d = 32
    B = 8

    key = jax.random.PRNGKey(0)
    ku, kv, ki, kj, kk = jax.random.split(key, 5)

    # nn.init.normal_(..., mean=0.0, std=0.1) for both embedding tables.
    u_weight = 0.1 * jax.random.normal(ku, (num_models, d), dtype=jnp.float32)
    v_weight = 0.1 * jax.random.normal(kv, (num_models, d), dtype=jnp.float32)

    i_idx = jax.random.randint(ki, (B,), 0, num_models, dtype=jnp.int32)
    j_idx = jax.random.randint(kj, (B,), 0, num_models, dtype=jnp.int32)
    k_idx = jax.random.randint(kk, (B,), 0, num_models, dtype=jnp.int32)

    out = vector_bt_norm(u_weight, v_weight, i_idx, j_idx, k_idx)
    out = jax.block_until_ready(out)

    ref = _reference(u_weight, v_weight, i_idx, j_idx, k_idx)
    assert out.shape == (B,)
    assert jnp.allclose(out, ref, atol=1e-3, rtol=1e-3), (out, ref)

    print("KERNEL_OK")
</pallas_src>

<mosaic_0001>
module attributes {stable_mosaic.version = 11 : i64} {
  func.func @_bt_kernel(%arg0: i32, %arg1: memref<3x128xi32, #tpu.memory_space<vmem>>, %arg2: memref<24x16xf32, #tpu.memory_space<vmem>>, %arg3: memref<1x128xf32, #tpu.memory_space<vmem>>) attributes {dimension_semantics = [#tpu.dimension_semantics<parallel>], iteration_bounds = array<i64: 1>, scalar_prefetch = 0 : i64, scratch_operands = 0 : i64, tpu.core_type = #tpu.core_type<tc>, window_params = [{transform_indices = @transform_0, window_bounds = array<i64: 3, 128>}, {pipeline_mode = #tpu.pipeline_mode<synchronous>, transform_indices = @transform_1, window_bounds = array<i64: 24, 16>}, {transform_indices = @transform_2, window_bounds = array<i64: 1, 128>}]} {
    %c0 = arith.constant 0 : index
    %c0_0 = arith.constant 0 : index
    %0 = vector.load %arg1[%c0, %c0_0] : memref<3x128xi32, #tpu.memory_space<vmem>>, vector<1x128xi32>
    %c1 = arith.constant 1 : index
    %c0_1 = arith.constant 0 : index
    %1 = vector.load %arg1[%c1, %c0_1] : memref<3x128xi32, #tpu.memory_space<vmem>>, vector<1x128xi32>
    %c2 = arith.constant 2 : index
    %c0_2 = arith.constant 0 : index
    %2 = vector.load %arg1[%c2, %c0_2] : memref<3x128xi32, #tpu.memory_space<vmem>>, vector<1x128xi32>
    %3 = tpu.iota {dimensions = array<i32: 0>} : vector<16x128xi32>
    %4 = vector.broadcast %1 : vector<1x128xi32> to vector<16x128xi32>
    %5 = arith.cmpi eq, %4, %3 : vector<16x128xi32>
    %6 = arith.extui %5 : vector<16x128xi1> to vector<16x128xi32>
    %7 = arith.sitofp %6 : vector<16x128xi32> to vector<16x128xf32>
    %8 = vector.broadcast %2 : vector<1x128xi32> to vector<16x128xi32>
    %9 = arith.cmpi eq, %8, %3 : vector<16x128xi32>
    %10 = arith.extui %9 : vector<16x128xi1> to vector<16x128xi32>
    %11 = arith.sitofp %10 : vector<16x128xi32> to vector<16x128xf32>
    %12 = arith.subf %7, %11 : vector<16x128xf32>
    %c0_3 = arith.constant 0 : index
    %c0_4 = arith.constant 0 : index
    %13 = vector.load %arg2[%c0_3, %c0_4] : memref<24x16xf32, #tpu.memory_space<vmem>>, vector<24x16xf32>
    %cst = arith.constant dense<0.000000e+00> : vector<24x128xf32>
    %14 = tpu.matmul %13, %12, %cst {dimension_numbers = #tpu.dot_dimension_numbers<[1], [0], [0], [1], [0, 0, 1, 1], [], []>, precision = #tpu.contract_precision<fp32>} : vector<24x16xf32>, vector<16x128xf32>, vector<24x128xf32> -> vector<24x128xf32>
    %15 = tpu.iota {dimensions = array<i32: 0>} : vector<24x128xi32>
    %16 = vector.broadcast %0 : vector<1x128xi32> to vector<24x128xi32>
    %17 = arith.cmpi eq, %16, %15 : vector<24x128xi32>
    %c16_i32 = arith.constant 16 : i32
    %18 = vector.broadcast %c16_i32 : i32 to vector<24x128xi32>
    %19 = arith.cmpi eq, %15, %18 : vector<24x128xi32>
    %20 = arith.ori %17, %19 : vector<24x128xi1>
    %cst_5 = arith.constant 0.000000e+00 : f32
    %21 = vector.broadcast %cst_5 : f32 to vector<24x128xf32>
    %22 = arith.select %20, %14, %21 : vector<24x128xi1>, vector<24x128xf32>
    %cst_6 = arith.constant dense<0.000000e+00> : vector<128xf32>
    %23 = vector.multi_reduction <add>, %22, %cst_6 [0] : vector<24x128xf32> to vector<128xf32>
    %24 = vector.shape_cast %23 : vector<128xf32> to vector<1x128xf32>
    %25 = arith.negf %24 : vector<1x128xf32>
    %26 = math.exp %25 : vector<1x128xf32>
    %cst_7 = arith.constant 1.000000e+00 : f32
    %27 = vector.broadcast %cst_7 : f32 to vector<1x128xf32>
    %28 = arith.addf %27, %26 : vector<1x128xf32>
    %29 = arith.divf %27, %28 : vector<1x128xf32>
    %c0_8 = arith.constant 0 : index
    %c0_9 = arith.constant 0 : index
    %30 = vector.load %arg3[%c0_8, %c0_9] : memref<1x128xf32, #tpu.memory_space<vmem>>, vector<1x128xf32>
    tpu.vector_store %arg3[%c0_8, %c0_9], %29 {strides = array<i32>} : memref<1x128xf32, #tpu.memory_space<vmem>>, vector<1x128xf32>,
    return
  }
  func.func @transform_0(%arg0: i32) -> (i32, i32) {
    %c0_i32 = arith.constant 0 : i32
    %c0_i32_0 = arith.constant 0 : i32
    return %c0_i32, %arg0 : i32, i32
  }
  func.func @transform_1(%arg0: i32) -> (i32, i32) {
    %c0_i32 = arith.constant 0 : i32
    %c0_i32_0 = arith.constant 0 : i32
    %c0_i32_1 = arith.constant 0 : i32
    return %c0_i32, %c0_i32_0 : i32, i32
  }
  func.func @transform_2(%arg0: i32) -> (i32, i32) {
    %c0_i32 = arith.constant 0 : i32
    %c0_i32_0 = arith.constant 0 : i32
    return %c0_i32, %arg0 : i32, i32
  }
}

</mosaic_0001>

<bundles_post_ra>
// kernel: vector_bt_norm.1
= control target key start
LH: loop header
LB: loop body
LE: loop exit
PB: predicated region body
PF: predicated region fallthrough
CT: control target
= control target key end

     0   :  { %v14_v0 = vlaneseq  ;;  %vm36_vm0 = vcmask 130048   ;;  %v330_v11 = vmov 0.0   ;;  %s382_s0 = inlined_call_operand.vmem [shape: s32[3,128], index: 0, kind: input, shape index: {}]   ;;  %s383_s1 = inlined_call_operand.vmem [shape: f32[24,16], index: 1, kind: input, shape index: {}]   ;;  %s384_s2 = inlined_call_operand.vmem [shape: f32[1,128], index: 2, kind: output, shape index: {}]  }
   0x1   :  { %v323_v1 = vld [vmem:[%s382_s0 + $0x1] ss:$0 sm:$0xff]  ;;  %v324_v3 = vld [vmem:[%s382_s0 + $0x2] ss:$0 sm:$0xff]  ;;  %v34_v4 = vld [vmem:[%s383_s1 + $0x8] sm:$0xff] }
   0x2   :  { %v349_v2 = vshrl.u32 %v14_v0, 7  ;;  %v35_v5 = vld [vmem:[%s383_s1 + $0x10] sm:$0xff]  ;;  %v41_v6 = vsel %vm36_vm0, %v34_v4, 0  ;;  %v33_v8 = vld [vmem:[%s383_s1] sm:$0xff] }
   0x3   :  { %v44_v7 = vsel %vm36_vm0, %v35_v5, 0  ;;  %v72_v10 = vand.u32 4294901760, %v41_v6  ;;  %v38_v15 = vsel %vm36_vm0, %v33_v8, 0  ;;  %v325_v5 = vld [vmem:[%s382_s0] ss:$0 sm:$0xff] }
   0x4   :  { %v366_v9 = vadd.s32 8, %v349_v2  ;;  %vm18_vm1 = vcmp.eq.s32.totalorder %v323_v1, %v349_v2  ;;  %vm25_vm2 = vcmp.eq.s32.totalorder %v324_v3, %v349_v2  ;;  %v80_v14 = vand.u32 4294901760, %v44_v7 }
   0x5   :  { %v313_v12 = vsel %vm18_vm1, 1.0, %v330_v11  ;;  %v315_v13 = vsel %vm25_vm2, 1.0, %v330_v11  ;;  %v73_v17 = vsub.f32 %v41_v6, %v72_v10  ;;  %v64_v21 = vand.u32 4294901760, %v38_v15 }
   0x6   :  { %vm19_vm3 = vcmp.eq.s32.totalorder %v323_v1, %v366_v9  ;;  %vm26_vm4 = vcmp.eq.s32.totalorder %v324_v3, %v366_v9  ;;  %v31_v16 = vsub.f32 %v313_v12, %v315_v13  ;;  %v81_v20 = vsub.f32 %v44_v7, %v80_v14 }
   0x7   :  { %v314_v18 = vsel %vm19_vm3, 1.0, %v330_v11  ;;  %v316_v19 = vsel %vm26_vm4, 1.0, %v330_v11  ;;  %v74_v24 = vand.u32 4294901760, %v73_v17  ;;  %v65_v25 = vsub.f32 %v38_v15, %v64_v21 }
   0x8   :  { %v32_v22 = vsub.f32 %v314_v18, %v316_v19  ;;  %v62_v23 = vand.u32 4294901760, %v31_v16  ;;  %v82_v29 = vand.u32 4294901760, %v81_v20  ;;  %v267_v4 = vadd.s32 16, %v349_v2 }
   0x9   :  { %v75_v27 = vsub.f32 %v73_v17, %v74_v24  ;;  %v66_v30 = vand.u32 4294901760, %v65_v25  ;;  %vm270_vm5 = vcmp.eq.s32.totalorder %v325_v5, %v366_v9  ;;  %vm269_vm8 = vcmp.eq.s32.totalorder %v325_v5, %v349_v2 }
   0xa   :  { %v60_v26 = vand.u32 4294901760, %v32_v22  ;;  %v110_v28 = vsub.f32 %v31_v16, %v62_v23  ;;  %v83_v37 = vsub.f32 %v81_v20, %v82_v29  ;;  %vm271_vm6 = vcmp.eq.s32.totalorder %v325_v5, %v267_v4 }
   0xb   :  { %v76_v31 = vand.u32 4294901760, %v75_v27  ;;  %v67_v34 = vsub.f32 %v65_v25, %v66_v30  ;;  %vm274_vm7 = vcmp.eq.s32.totalorder %v267_v4, 16 }
   0xc   :  { %318 = vmatpush.msra.mxu2 %v60_v26  ;;  %v104_v32 = vsub.f32 %v32_v22, %v60_v26  ;;  %v111_v33 = vand.u32 4294901760, %v110_v28  ;;  %61 = vmatpush.msra.mxu0 %v60_v26  ;;  %v84_v42 = vand.u32 4294901760, %v83_v37  ;;  %vm277_vm9 = vmor %vm271_vm6, %vm274_vm7 }
   0xd   :  { %v68_v38 = vand.u32 4294901760, %v67_v34 }
   0xe   :  { %319 = vmatpush.msra.mxu2 %v62_v23  ;;  %v105_v35 = vand.u32 4294901760, %v104_v32  ;;  %v112_v36 = vsub.f32 %v110_v28, %v111_v33  ;;  %63 = vmatpush.msra.mxu0 %v62_v23 }
   0xf   :  { %77 = vmatmul.f32.vlgmr.msra.gmra.mxu2 %v76_v31  ;;  %69 = vmatmul.f32.vlgmr.msra.gmra.mxu0 %v68_v38 }
  0x10   :  { %v106_v39 = vsub.f32 %v104_v32, %v105_v35  ;;  %144 = vmatpush.msrb.mxu2 %v104_v32  ;;  %218 = vmatpush.msrb.mxu0 %v105_v35  ;;  %v113_v41 = vand.u32 4294901760, %v112_v36 }
  0x12   :  { %v107_v40 = vand.u32 4294901760, %v106_v39  ;;  %147 = vmatpush.msrb.mxu2 %v110_v28  ;;  %222 = vmatpush.msrb.mxu0 %v111_v33 }
  0x14   :  { %320 = vmatpush.msra.mxu3 %v107_v40  ;;  %108 = vmatpush.msra.mxu1 %v107_v40 }
  0x16   :  { %321 = vmatpush.msra.mxu3 %v113_v41  ;;  %114 = vmatpush.msra.mxu1 %v113_v41 }
  0x17   :  { %85 = vmatmul.f32.gmra.mxu2 %v84_v42  ;;  %120 = vmatmul.f32.vlgmr.msra.gmra.mxu3 %v72_v10 }
  0x18   :  { %179 = vmatpush.msrb.mxu3 %v60_v26  ;;  %116 = vmatmul.f32.vlgmr.msra.gmra.mxu1 %v64_v21 }
  0x19   :  { %251 = vmatpush.msrb.mxu1 %v60_v26  ;;  %224 = vmatmul.f32.vlgmr.msrb.gmra.mxu0 %v64_v21 }
  0x1a   :  { %181 = vmatpush.msrb.mxu3 %v62_v23 }
  0x1b   :  { %253 = vmatpush.msrb.mxu1 %v62_v23 }
  0x1f   :  { %124 = vmatmul.f32.gmra.mxu3 %v80_v14  ;;  %150 = vmatmul.f32.vlgmr.msrb.gmra.mxu2 %v65_v25 }
  0x20   :  { %255 = vmatmul.f32.vlgmr.msrb.gmra.mxu1 %v64_v21 }
  0x21   :  { %228 = vmatmul.f32.gmra.mxu0 %v72_v10 }
  0x27   :  { %155 = vmatmul.f32.gmra.mxu2 %v73_v17  ;;  %185 = vmatmul.f32.vlgmr.msrb.gmra.mxu3 %v66_v30 }
  0x28   :  { %259 = vmatmul.f32.gmra.mxu1 %v72_v10 }
  0x29   :  { %232 = vmatmul.f32.gmra.mxu0 %v80_v14 }
  0x2f   :  { %160 = vmatmul.f32.gmra.mxu2 %v81_v20  ;;  %191 = vmatmul.f32.gmra.mxu3 %v74_v24 }
  0x30   :  { %263 = vmatmul.f32.gmra.mxu1 %v80_v14 }
  0x37   :  { %197 = vmatmul.f32.gmra.mxu3 %v82_v29 }
  0x8c   :  { %v70_v46 = vpop.f32.mrf.mxu0 }
  0x92   :  { %v78_v43 = vpop.f32.mrf.mxu2 }
  0x95   :  { %v117_v47 = vpop.f32.mrf.mxu1 }
  0x96   :  { %v225_v50 = vpop.f32.mrf.mxu0  ;;  %v118_v54 = vadd.f32 %v117_v47, %v70_v46 }
  0x9a   :  { %v86_v44 = vpop.f32.mrf.mxu2  ;;  %v121_v45 = vpop.f32.mrf.mxu3 }
  0x9b   :  { %v122_v55 = vadd.f32 %v121_v45, %v78_v43 }
  0x9d   :  { %v256_v51 = vpop.f32.mrf.mxu1 }
  0x9e   :  { %v229_v56 = vpop.f32.mrf.mxu0 }
  0xa2   :  { %v125_v48 = vpop.f32.mrf.mxu3  ;;  %v151_v49 = vpop.f32.mrf.mxu2 }
  0xa3   :  { %v152_v58 = vadd.f32 %v151_v49, %v118_v54  ;;  %v126_v1 = vadd.f32 %v125_v48, %v86_v44 }
  0xa5   :  { %v260_v60 = vpop.f32.mrf.mxu1 }
  0xa6   :  { %v233_v10 = vpop.f32.mrf.mxu0 }
  0xaa   :  { %v186_v52 = vpop.f32.mrf.mxu3  ;;  %v156_v53 = vpop.f32.mrf.mxu2 }
  0xab   :  { %v157_v57 = vadd.f32 %v156_v53, %v122_v55  ;;  %v187_v61 = vadd.f32 %v186_v52, %v152_v58 }
  0xad   :  { %v226_v3 = vadd.f32 %v225_v50, %v187_v61  ;;  %v264_v13 = vpop.f32.mrf.mxu1 }
  0xaf   :  { %v257_v11 = vadd.f32 %v256_v51, %v226_v3 }
  0xb1   :  { %v278_v16 = vsel %vm269_vm8, %v257_v11, 0.0 }
  0xb2   :  { %v192_v59 = vpop.f32.mrf.mxu3  ;;  %v161_v0 = vpop.f32.mrf.mxu2 }
  0xb3   :  { %v193_v62 = vadd.f32 %v192_v59, %v157_v57  ;;  %v162_v6 = vadd.f32 %v161_v0, %v126_v1 }
  0xb5   :  { %v230_v63 = vadd.f32 %v229_v56, %v193_v62 }
  0xb7   :  { %v261_v7 = vadd.f32 %v260_v60, %v230_v63 }
  0xb9   :  { %v279_v14 = vsel %vm270_vm5, %v261_v7, 0.0 }
  0xba   :  { %v198_v8 = vpop.f32.mrf.mxu3  ;;  %v281_v18 = vadd.f32 %v279_v14, %v278_v16 }
  0xbb   :  { %v199_v12 = vadd.f32 %v198_v8, %v162_v6 }
  0xbd   :  { %v234_v15 = vadd.f32 %v233_v10, %v199_v12 }
  0xbf   :  { %v265_v17 = vadd.f32 %v264_v13, %v234_v15 }
  0xc1   :  { %v280_v19 = vsel %vm277_vm9, %v265_v17, 0.0 }
  0xc2   :  { %v282_v20 = vadd.f32 %v281_v18, %v280_v19 }
  0xc4   :  { %v283_v21 = vrot.slane %v282_v20, 4 }
  0xc6   :  { %v284_v22 = vadd.f32 %v283_v21, %v282_v20 }
  0xc8   :  { %v285_v9 = vrot.slane %v284_v22, 2 }
  0xca   :  { %v286_v23 = vadd.f32 %v285_v9, %v284_v22 }
  0xcc   :  { %v287_v24 = vrot.slane %v286_v23, 1 }
  0xce   :  { %v288_v25 = vadd.f32 %v287_v24, %v286_v23 }
  0xd0   :  { %v317_v26 = vmul.f32 -1.442695, %v288_v25 }
  0xd2   :  { %326 = vpow2.f32 %v317_v26 }
  0xd8   :  { %v327_v27 = vpop.eup %326 }
  0xd9   :  { %v292_v28 = vadd.f32 1.0, %v327_v27 }
  0xdb   :  { %328 = vrcp.f32 %v292_v28  ;;  %v304_v31 = vand.u32 2147483648, %v292_v28  ;;  %v302_v33 = vand.u32 2147483647, %v292_v28  ;;  %vm298_vm11 = vweird.f32 %v292_v28 }
  0xdd   :  { %v305_v35 = vor.u32 1.1754944e-38, %v304_v31  ;;  %vm303_vm13 = vcmp.eq.f32.partialorder %v302_v33, 8.507059e+37 }
  0xe1   :  { %v329_v2 = vpop.eup %328 }
  0xe2   :  { %v294_v29 = vmul.f32 %v329_v2, %v292_v28  ;;  %vm299_vm10 = vweird.f32 %v329_v2 }
  0xe3   :  { %vm300_vm12 = vmor %vm298_vm11, %vm299_vm10 }
  0xe4   :  { %v295_v30 = vsub.f32 1.0, %v294_v29 }
  0xe6   :  { %v296_v32 = vmul.f32 %v329_v2, %v295_v30 }
  0xe8   :  { %v297_v34 = vadd.f32 %v329_v2, %v296_v32 }
  0xea   :  { %v301_v36 = vsel %vm300_vm12, %v329_v2, %v297_v34 }
  0xeb   :  { %v306_v37 = vsel %vm303_vm13, %v305_v35, %v301_v36 }
  0xec   :  { %308 = vst [vmem:[%s384_s2] sm:$0x1] %v306_v37 }

</bundles_post_ra>
